<compile_context>
chip_gen: v6e
topology: v6e:2x2x1
jax: 0.10.0
libtpu: 0.0.40
codegen_flags: <defaults>
</compile_context>

<pallas_src>
import math

import jax
import jax.numpy as jnp
from jax.experimental import pallas as pl
from jax.experimental.pallas import tpu as pltpu

# --- config ---
CHANNEL_DIM = 32
MOTION_W_DIM = 16
W_DIM = 32
RES = 4
R2 = RES * RES                          # 16 spatial positions
LRELU_ALPHA = 0.2
LRELU_GAIN = math.sqrt(2.0)             # bias_act default gain for 'lrelu'
LR_MULT = 1.0                           # FullyConnectedLayer default

CONST_LEN = CHANNEL_DIM * R2            # 512
MW_LEN = MOTION_W_DIM * R2              # 256
VAR_LEN = CHANNEL_DIM * R2              # 512
OUT_LEN = CONST_LEN + MW_LEN + VAR_LEN  # 1280 = 10 * 128 lanes (unmasked vst)
C_TOTAL = CHANNEL_DIM + MOTION_W_DIM + CHANNEL_DIM  # 80 output channels


def temporal_input_kernel(mw_ref, w_ref, const_ref, e_mw_ref, fcw_ref, fcb_ref, out_ref):
    """One batch tile of TemporalInput.forward, written as three lane slices."""
    tb = out_ref.shape[0]
    out_dt = out_ref.dtype

    # const channels: one shared row broadcast over the batch tile (sublane bcast).
    out_ref[:, 0:CONST_LEN] = jnp.broadcast_to(
        const_ref[...].astype(out_dt), (tb, CONST_LEN))

    # motion_w channels: each scalar repeated R2 times along lanes via a 0/1
    # expansion matmul (one cheap MXU push, no cross-lane relayout).
    mw_rep = jnp.dot(mw_ref[...], e_mw_ref[...], preferred_element_type=jnp.float32)
    out_ref[:, CONST_LEN:CONST_LEN + MW_LEN] = mw_rep.astype(out_dt)

    # variable channels: fc(w); weight_gain / bias_gain / sqrt(2) lrelu gain and
    # the var_repeat spatial repeat are all folded into the packed params.
    h = jnp.dot(w_ref[...], fcw_ref[...], preferred_element_type=jnp.float32) + fcb_ref[...]
    var = jnp.where(h >= 0.0, h, LRELU_ALPHA * h)
    out_ref[:, CONST_LEN + MW_LEN:] = var.astype(out_dt)


def init_params(key):
    """Raw parameters matching TemporalInput / FullyConnectedLayer init shapes."""
    k_const, k_w, k_b = jax.random.split(key, 3)
    const = jax.random.normal(k_const, (1, CHANNEL_DIM, RES, RES), jnp.float32)
    fc_w = jax.random.normal(k_w, (CHANNEL_DIM, W_DIM), jnp.float32) / LR_MULT  # [out, in]
    # Module default is bias_init=0; use small random values so the bias path is
    # actually exercised by the correctness check (pretend-trained weights).
    fc_b = 0.1 * jax.random.normal(k_b, (CHANNEL_DIM,), jnp.float32)
    return {"const": const, "fc_w": fc_w, "fc_b": fc_b}


def pack_params(raw):
    """One-time, off-hot-path packing: fold static gains + spatial repeat."""
    weight_gain = LR_MULT / math.sqrt(W_DIM)
    bias_gain = LR_MULT
    # lrelu is positively homogeneous, so the sqrt(2) output gain folds into w & b.
    w_eff = raw["fc_w"].T * (weight_gain * LRELU_GAIN)               # [W_DIM, C]
    b_eff = raw["fc_b"] * (bias_gain * LRELU_GAIN)                   # [C]
    # Fold the var_repeat spatial repeat into the fc parameters.
    fc_w_exp = jnp.repeat(w_eff, R2, axis=1)                         # [W_DIM, C*R2]
    fc_b_exp = jnp.repeat(b_eff, R2)[None, :]                        # [1, C*R2]
    # motion_w spatial repeat as a 0/1 expansion matrix.
    e_mw = jnp.repeat(jnp.eye(MOTION_W_DIM, dtype=jnp.float32), R2, axis=1)  # [MW, MW*R2]
    const_flat = raw["const"].reshape(1, CONST_LEN)                  # [1, C*R2]
    return {"const_flat": const_flat, "e_mw": e_mw,
            "fc_w_exp": fc_w_exp, "fc_b_exp": fc_b_exp}


def _choose_batch_tile(B, tb_max):
    """Sublane-aligned batch tile; prefer >=2 grid steps for v7x's 2 TCs."""
    tb = min(tb_max, 8 * pl.cdiv(B, 8))
    if B >= 16:
        # Cap at ~half the batch (rounded up to a multiple of 8) so megacore
        # sharding over the "parallel" grid axis always has >= 2 steps.
        tb = min(tb, 8 * pl.cdiv(pl.cdiv(B, 2), 8))
    tb = max(tb, 8)
    if tb >= B:
        tb = B  # single block: block dim == full array dim (legal, no padding)
    return tb


def temporal_input(t, motion_w, w, packed, *, tb_max=512, out_dtype=jnp.float32):
    """Pallas-backed TemporalInput.forward. `t` is unused by the module's forward."""
    del t  # matches the PyTorch module: `t` is never read in forward()
    B = motion_w.shape[0]
    tb = _choose_batch_tile(B, tb_max)
    grid = pl.cdiv(B, tb)  # ragged tail block (if any) is write-masked by Pallas

    resident = lambda i: (0, 0)  # params stay VMEM-resident across the grid
    out_itemsize = jnp.dtype(out_dtype).itemsize
    vmem_est = (2 * tb * OUT_LEN * out_itemsize              # double-buffered output
                + 2 * tb * (MOTION_W_DIM + W_DIM) * 4        # double-buffered inputs
                + 4 * (CONST_LEN + MOTION_W_DIM * MW_LEN
                       + W_DIM * VAR_LEN + VAR_LEN))         # resident params
    cp_kwargs = dict(dimension_semantics=("parallel",))
    if vmem_est > (12 << 20):  # stay clear of v5e's 16 MiB scoped-VMEM default
        cp_kwargs["vmem_limit_bytes"] = int(min(2 * vmem_est, 96 << 20))

    out_flat = pl.pallas_call(
        temporal_input_kernel,
        out_shape=jax.ShapeDtypeStruct((B, OUT_LEN), out_dtype),
        grid=(grid,),
        in_specs=[
            pl.BlockSpec((tb, MOTION_W_DIM), lambda i: (i, 0)),
            pl.BlockSpec((tb, W_DIM), lambda i: (i, 0)),
            pl.BlockSpec((1, CONST_LEN), resident),
            pl.BlockSpec((MOTION_W_DIM, MW_LEN), resident),
            pl.BlockSpec((W_DIM, VAR_LEN), resident),
            pl.BlockSpec((1, VAR_LEN), resident),
        ],
        out_specs=pl.BlockSpec((tb, OUT_LEN), lambda i: (i, 0)),
        compiler_params=pltpu.CompilerParams(**cp_kwargs),
    )(motion_w, w, packed["const_flat"], packed["e_mw"],
      packed["fc_w_exp"], packed["fc_b_exp"])

    # Flattened layout is channel-major / spatial-minor, matching torch.cat(dim=1)
    # followed by .view(B, C_total, res, res).
    return out_flat.reshape(B, C_TOTAL, RES, RES)


def temporal_input_ref(t, motion_w, w, raw):
    """Pure-JAX reference mirroring the PyTorch forward exactly."""
    del t
    B = motion_w.shape[0]
    const = jnp.broadcast_to(raw["const"], (B, CHANNEL_DIM, RES, RES))
    mw_part = jnp.broadcast_to(motion_w[:, :, None, None], (B, MOTION_W_DIM, RES, RES))
    h = w @ raw["fc_w"].T * (LR_MULT / math.sqrt(W_DIM)) + raw["fc_b"][None, :] * LR_MULT
    y = jnp.where(h >= 0.0, h, LRELU_ALPHA * h) * LRELU_GAIN
    var_part = jnp.broadcast_to(y[:, :, None, None], (B, CHANNEL_DIM, RES, RES))
    return jnp.concatenate([const, mw_part, var_part], axis=1)


if __name__ == "__main__":
    key = jax.random.PRNGKey(0)
    k_params, k_mw, k_w = jax.random.split(key, 3)

    raw = init_params(k_params)
    packed = pack_params(raw)

    # Primary check: small batch (B=2), single full-array block, f32 exact match.
    B = 2
    t = jnp.arange(B, dtype=jnp.float32)  # present in the API, unused by forward()
    motion_w = jax.random.normal(k_mw, (B, MOTION_W_DIM), jnp.float32)
    w = jax.random.normal(k_w, (B, W_DIM), jnp.float32)

    out = jax.block_until_ready(temporal_input(t, motion_w, w, packed))
    ref = jax.block_until_ready(temporal_input_ref(t, motion_w, w, raw))
    assert out.shape == (B, C_TOTAL, RES, RES), out.shape
    assert jnp.allclose(out, ref, rtol=1e-4, atol=1e-4), "mismatch vs JAX reference (B=2)"

    # Secondary check: ragged batch (B=20) with a tiny tile to exercise the
    # multi-step grid and the Pallas-masked tail block (no pad/slice in wrapper).
    B2 = 20
    k_mw2, k_w2 = jax.random.split(jax.random.PRNGKey(1))
    t2 = jnp.arange(B2, dtype=jnp.float32)
    motion_w2 = jax.random.normal(k_mw2, (B2, MOTION_W_DIM), jnp.float32)
    w2 = jax.random.normal(k_w2, (B2, W_DIM), jnp.float32)
    out2 = jax.block_until_ready(temporal_input(t2, motion_w2, w2, packed, tb_max=8))
    ref2 = jax.block_until_ready(temporal_input_ref(t2, motion_w2, w2, raw))
    assert out2.shape == (B2, C_TOTAL, RES, RES), out2.shape
    assert jnp.allclose(out2, ref2, rtol=1e-4, atol=1e-4), "mismatch vs JAX reference (B=20)"

    print("KERNEL_OK")
</pallas_src>

<mosaic_0001>
module attributes {stable_mosaic.version = 11 : i64} {
  func.func @temporal_input_kernel(%arg0: i32, %arg1: memref<2x16xf32, #tpu.memory_space<vmem>>, %arg2: memref<2x32xf32, #tpu.memory_space<vmem>>, %arg3: memref<1x512xf32, #tpu.memory_space<vmem>>, %arg4: memref<16x256xf32, #tpu.memory_space<vmem>>, %arg5: memref<32x512xf32, #tpu.memory_space<vmem>>, %arg6: memref<1x512xf32, #tpu.memory_space<vmem>>, %arg7: memref<2x1280xf32, #tpu.memory_space<vmem>>) attributes {dimension_semantics = [#tpu.dimension_semantics<parallel>], iteration_bounds = array<i64: 1>, scalar_prefetch = 0 : i64, scratch_operands = 0 : i64, tpu.core_type = #tpu.core_type<tc>, window_params = [{transform_indices = @transform_0, window_bounds = array<i64: 2, 16>}, {transform_indices = @transform_1, window_bounds = array<i64: 2, 32>}, {pipeline_mode = #tpu.pipeline_mode<synchronous>, transform_indices = @transform_2, window_bounds = array<i64: 1, 512>}, {pipeline_mode = #tpu.pipeline_mode<synchronous>, transform_indices = @transform_3, window_bounds = array<i64: 16, 256>}, {pipeline_mode = #tpu.pipeline_mode<synchronous>, transform_indices = @transform_4, window_bounds = array<i64: 32, 512>}, {pipeline_mode = #tpu.pipeline_mode<synchronous>, transform_indices = @transform_5, window_bounds = array<i64: 1, 512>}, {transform_indices = @transform_6, window_bounds = array<i64: 2, 1280>}]} {
    %c0 = arith.constant 0 : index
    %c0_0 = arith.constant 0 : index
    %0 = vector.load %arg3[%c0, %c0_0] : memref<1x512xf32, #tpu.memory_space<vmem>>, vector<1x512xf32>
    %1 = vector.shape_cast %0 : vector<1x512xf32> to vector<1x512xf32>
    %2 = vector.broadcast %1 : vector<1x512xf32> to vector<2x512xf32>
    %c0_1 = arith.constant 0 : index
    %c0_2 = arith.constant 0 : index
    %3 = vector.load %arg7[%c0_1, %c0_2] : memref<2x1280xf32, #tpu.memory_space<vmem>>, vector<2x512xf32>
    tpu.vector_store %arg7[%c0_1, %c0_2], %2 {strides = array<i32>} : memref<2x1280xf32, #tpu.memory_space<vmem>>, vector<2x512xf32>,
    %c0_3 = arith.constant 0 : index
    %c0_4 = arith.constant 0 : index
    %4 = vector.load %arg1[%c0_3, %c0_4] : memref<2x16xf32, #tpu.memory_space<vmem>>, vector<2x16xf32>
    %c0_5 = arith.constant 0 : index
    %c0_6 = arith.constant 0 : index
    %5 = vector.load %arg4[%c0_5, %c0_6] : memref<16x256xf32, #tpu.memory_space<vmem>>, vector<16x256xf32>
    %cst = arith.constant dense<0.000000e+00> : vector<2x256xf32>
    %6 = tpu.matmul %4, %5, %cst {dimension_numbers = #tpu.dot_dimension_numbers<[1], [0], [0], [1], [0, 0, 1, 1], [], []>} : vector<2x16xf32>, vector<16x256xf32>, vector<2x256xf32> -> vector<2x256xf32>
    %c0_7 = arith.constant 0 : index
    %c512 = arith.constant 512 : index
    %7 = vector.load %arg7[%c0_7, %c512] : memref<2x1280xf32, #tpu.memory_space<vmem>>, vector<2x256xf32>
    tpu.vector_store %arg7[%c0_7, %c512], %6 {strides = array<i32>} : memref<2x1280xf32, #tpu.memory_space<vmem>>, vector<2x256xf32>,
    %c0_8 = arith.constant 0 : index
    %c0_9 = arith.constant 0 : index
    %8 = vector.load %arg2[%c0_8, %c0_9] : memref<2x32xf32, #tpu.memory_space<vmem>>, vector<2x32xf32>
    %c0_10 = arith.constant 0 : index
    %c0_11 = arith.constant 0 : index
    %9 = vector.load %arg5[%c0_10, %c0_11] : memref<32x512xf32, #tpu.memory_space<vmem>>, vector<32x512xf32>
    %cst_12 = arith.constant dense<0.000000e+00> : vector<2x512xf32>
    %10 = tpu.matmul %8, %9, %cst_12 {dimension_numbers = #tpu.dot_dimension_numbers<[1], [0], [0], [1], [0, 0, 1, 1], [], []>} : vector<2x32xf32>, vector<32x512xf32>, vector<2x512xf32> -> vector<2x512xf32>
    %c0_13 = arith.constant 0 : index
    %c0_14 = arith.constant 0 : index
    %11 = vector.load %arg6[%c0_13, %c0_14] : memref<1x512xf32, #tpu.memory_space<vmem>>, vector<1x512xf32>
    %12 = vector.broadcast %11 : vector<1x512xf32> to vector<2x512xf32>
    %13 = arith.addf %10, %12 : vector<2x512xf32>
    %cst_15 = arith.constant 0.000000e+00 : f32
    %14 = vector.broadcast %cst_15 : f32 to vector<2x512xf32>
    %15 = arith.cmpf oge, %13, %14 : vector<2x512xf32>
    %cst_16 = arith.constant 2.000000e-01 : f32
    %16 = vector.broadcast %cst_16 : f32 to vector<2x512xf32>
    %17 = arith.mulf %16, %13 : vector<2x512xf32>
    %18 = arith.select %15, %13, %17 : vector<2x512xi1>, vector<2x512xf32>
    %c0_17 = arith.constant 0 : index
    %c768 = arith.constant 768 : index
    %19 = vector.load %arg7[%c0_17, %c768] : memref<2x1280xf32, #tpu.memory_space<vmem>>, vector<2x512xf32>
    tpu.vector_store %arg7[%c0_17, %c768], %18 {strides = array<i32>} : memref<2x1280xf32, #tpu.memory_space<vmem>>, vector<2x512xf32>,
    return
  }
  func.func @transform_0(%arg0: i32) -> (i32, i32) {
    %c0_i32 = arith.constant 0 : i32
    %c0_i32_0 = arith.constant 0 : i32
    return %arg0, %c0_i32 : i32, i32
  }
  func.func @transform_1(%arg0: i32) -> (i32, i32) {
    %c0_i32 = arith.constant 0 : i32
    %c0_i32_0 = arith.constant 0 : i32
    return %arg0, %c0_i32 : i32, i32
  }
  func.func @transform_2(%arg0: i32) -> (i32, i32) {
    %c0_i32 = arith.constant 0 : i32
    %c0_i32_0 = arith.constant 0 : i32
    %c0_i32_1 = arith.constant 0 : i32
    return %c0_i32, %c0_i32_0 : i32, i32
  }
  func.func @transform_3(%arg0: i32) -> (i32, i32) {
    %c0_i32 = arith.constant 0 : i32
    %c0_i32_0 = arith.constant 0 : i32
    %c0_i32_1 = arith.constant 0 : i32
    return %c0_i32, %c0_i32_0 : i32, i32
  }
  func.func @transform_4(%arg0: i32) -> (i32, i32) {
    %c0_i32 = arith.constant 0 : i32
    %c0_i32_0 = arith.constant 0 : i32
    %c0_i32_1 = arith.constant 0 : i32
    return %c0_i32, %c0_i32_0 : i32, i32
  }
  func.func @transform_5(%arg0: i32) -> (i32, i32) {
    %c0_i32 = arith.constant 0 : i32
    %c0_i32_0 = arith.constant 0 : i32
    %c0_i32_1 = arith.constant 0 : i32
    return %c0_i32, %c0_i32_0 : i32, i32
  }
  func.func @transform_6(%arg0: i32) -> (i32, i32) {
    %c0_i32 = arith.constant 0 : i32
    %c0_i32_0 = arith.constant 0 : i32
    return %arg0, %c0_i32 : i32, i32
  }
}

</mosaic_0001>

<bundles_post_ra>
// kernel: tpu_custom_call.1
= control target key start
LH: loop header
LB: loop body
LE: loop exit
PB: predicated region body
PF: predicated region fallthrough
CT: control target
= control target key end

     0   :  { %11 = vsyncpa [#allocation3], 0  ;;  %s666_s0 = inlined_call_operand.hbm [shape: f32[2,16], index: 0, kind: input, shape index: {}]   ;;  %s667_s1 = inlined_call_operand.hbm [shape: f32[2,32], index: 1, kind: input, shape index: {}]   ;;  %s668_s2 = inlined_call_operand.hbm [shape: f32[1,512], index: 2, kind: input, shape index: {}]   ;;  %s669_s3 = inlined_call_operand.hbm [shape: f32[16,256], index: 3, kind: input, shape index: {}]   ;;  %s670_s4 = inlined_call_operand.hbm [shape: f32[32,512], index: 4, kind: input, shape index: {}]   ;;  %s671_s5 = inlined_call_operand.vmem [shape: f32[1,512], index: 5, kind: input, shape index: {}]   ;;  %s672_s6 = inlined_call_operand.hbm [shape: f32[2,1280], index: 6, kind: output, shape index: {}]  }
   0x1   :  { %12 = vsyncpa [#allocation6], 0 }
   0x2   :  { %13 = vsyncpa [#allocation9], 0 }
   0x3   :  { %14 = vsyncpa [#allocation4], 0  ;;  %s596_s21 = smov [#allocation5]   ;;  %s597_s23 = smov [#allocation8]  }
   0x4   :  { %s31_s22 = sshll.u32 %s596_s21, 4  ;;  %s50_s24 = sshll.u32 %s597_s23, 4  ;;  %s32_s22 = int_to_ptr.vmem [resolvable:$true] %s31_s22  ;;  %s51_s24 = int_to_ptr.vmem [resolvable:$true] %s50_s24 }
   0x5   :  { %s476_s25 = scalar_lea.vmem %s32_s22, 32  ;;  %p481_p1 = scmp.lt.s32.totalorder %s32_s22, %s32_s22 }
   0x6   :  { %p477_p0 = scmp.ne.s32.totalorder %s32_s22, %s476_s25  ;;  %p482_p2 = scmp.lt.s32.totalorder %s476_s25, %s476_s25 }
   0x8   :  { %p483_p3 = por %p482_p2, %p481_p1 }
   0xa   :  { %p484_p4 = pnand %p483_p3, %p477_p0 }
   0xc   :  { %487 = shalt.err (!%p484_p4)
}
   0xd   :  { %34 = dma.hbm_to_vmem [thread:$0]  %s667_s1, 32, %s32_s22, [#allocation6]  }
   0xe   :  { %s496_s28 = scalar_lea.vmem %s51_s24, 512  ;;  %p501_p6 = scmp.lt.s32.totalorder %s51_s24, %s51_s24 }
   0xf   :  { %p497_p5 = scmp.ne.s32.totalorder %s51_s24, %s496_s28  ;;  %p502_p7 = scmp.lt.s32.totalorder %s496_s28, %s496_s28 }
  0x11   :  { %p503_p8 = por %p502_p7, %p501_p6 }
  0x13   :  { %p504_p9 = pnand %p503_p8, %p497_p5 }
  0x15   :  { %507 = shalt.err (!%p504_p9)
}
  0x16   :  { %s598_s29 = smov 256   ;;  %s599_s30 = smov 16  }
  0x17   :  { %56 = dma.hbm_to_vmem [thread:$0]  %s669_s3, 512, %s51_s24, [#allocation9], %s598_s29, %s598_s29, %s599_s30  }
  0x18   :  { %s600_s9 = smov [#allocation2]   ;;  %s601_s11 = smov [#allocation7]  }
  0x19   :  { %s21_s10 = sshll.u32 %s600_s9, 4  ;;  %s41_s12 = sshll.u32 %s601_s11, 4  ;;  %s22_s10 = int_to_ptr.vmem [resolvable:$true] %s21_s10  ;;  %s42_s12 = int_to_ptr.vmem [resolvable:$true] %s41_s12 }
  0x1a   :  { %s516_s1 = scalar_lea.vmem %s22_s10, 32  ;;  %p521_p11 = scmp.lt.s32.totalorder %s22_s10, %s22_s10 }
  0x1b   :  { %p517_p10 = scmp.ne.s32.totalorder %s22_s10, %s516_s1  ;;  %p522_p12 = scmp.lt.s32.totalorder %s516_s1, %s516_s1 }
  0x1d   :  { %p523_p13 = por %p522_p12, %p521_p11 }
  0x1f   :  { %p524_p0 = pnand %p523_p13, %p517_p10 }
  0x21   :  { %527 = shalt.err (!%p524_p0)
}
  0x22   :  { %24 = dma.hbm_to_vmem [thread:$0]  %s666_s0, 32, %s22_s10, [#allocation3]  }
  0x23   :  { %s536_s15 = scalar_lea.vmem %s42_s12, 64  ;;  %p541_p2 = scmp.lt.s32.totalorder %s42_s12, %s42_s12 }
  0x24   :  { %p537_p1 = scmp.ne.s32.totalorder %s42_s12, %s536_s15  ;;  %p542_p3 = scmp.lt.s32.totalorder %s536_s15, %s536_s15 }
  0x26   :  { %p543_p4 = por %p542_p3, %p541_p2 }
  0x28   :  { %p544_p5 = pnand %p543_p4, %p537_p1 }
  0x2a   :  { %547 = shalt.err (!%p544_p5)
}
  0x2b   :  { %44 = dma.hbm_to_vmem [thread:$0]  %s668_s2, 64, %s42_s12, [#allocation6]  }
  0x2c   :  { %s602_s17 = smov [#allocation10]  }
  0x2d   :  { %s62_s18 = sshll.u32 %s602_s17, 4  ;;  %s63_s18 = int_to_ptr.vmem [resolvable:$true] %s62_s18 }
  0x2e   :  { %s556_s19 = scalar_lea.vmem %s63_s18, 2048  ;;  %p561_p7 = scmp.lt.s32.totalorder %s63_s18, %s63_s18 }
  0x2f   :  { %p557_p6 = scmp.ne.s32.totalorder %s63_s18, %s556_s19  ;;  %p562_p8 = scmp.lt.s32.totalorder %s556_s19, %s556_s19 }
  0x31   :  { %p563_p9 = por %p562_p8, %p561_p7 }
  0x33   :  { %p564_p10 = pnand %p563_p9, %p557_p6 }
  0x35   :  { %567 = shalt.err (!%p564_p10)
}
  0x36   :  { %s603_s0 = smov 512   ;;  %s604_s20 = smov 32  }
  0x37   :  { %68 = dma.hbm_to_vmem [thread:$0]  %s670_s4, 2048, %s63_s18, [#allocation9], %s603_s0, %s603_s0, %s604_s20  }
  0x38   :  { %588 = dma.done.wait [#allocation3], 32  }
  0x39   :  { %589 = vsyncadd [#allocation3], 4294967264 }
  0x3a   :  { %590 = dma.done.wait [#allocation6], 96  }
  0x3b   :  { %591 = vsyncadd [#allocation6], 4294967200 }
  0x3c   :  { %592 = dma.done.wait [#allocation9], 2560  }
  0x3d   :  { %593 = vsyncadd [#allocation9], 4294964736  ;;  %v605_v0 = vmov 0.0   ;;  %v127_v1 = vld [vmem:[#allocation8 + $0x18] sm:$0xff]  ;;  %v229_v2 = vld [vmem:[#allocation10 + $0x68] sm:$0xff]  ;;  %vm128_vm0 = vcmask 130048   ;;  %v88_v23 = vlaneseq }
  0x3e   :  { %196 = vmatprep.mubr.f32.mxu0 %v605_v0  ;;  %322 = vmatprep.mubr.f32.mxu1 %v605_v0  ;;  %v126_v3 = vld [vmem:[#allocation8 + $0x10] sm:$0xff]  ;;  %v228_v4 = vld [vmem:[#allocation10 + $0x60] sm:$0xff]  ;;  %v125_v5 = vld [vmem:[#allocation8 + $0x8] sm:$0xff]  ;;  %vm254_vm1 = vcmask 261120   ;;  %v606_v28 = vmov 1983009808  }
  0x3f   :  { %160 = vmatprep.subr.mxu0 %v127_v1  ;;  %282 = vmatprep.subr.mxu1 %v229_v2  ;;  %v225_v6 = vld [vmem:[#allocation10 + $0x48] sm:$0xff]  ;;  %v124_v7 = vld [vmem:[#allocation8] sm:$0xff]  ;;  %v123_v9 = vld [vmem:[#allocation2] sm:$0x3]  ;;  %v89_v24 = vshrl.u32 %v88_v23, 7  ;;  %v107_v29 = vunpack.c.l.s4 %v606_v28 }
  0x40   :  { %161 = vmatpush1.msra.mxu0 %v126_v3  ;;  %283 = vmatpush1.msra.mxu1 %v228_v4  ;;  %v224_v8 = vld [vmem:[#allocation10 + $0x40] sm:$0xff]  ;;  %v221_v10 = vld [vmem:[#allocation10 + $0x28] sm:$0xff]  ;;  %v231_v11 = vld [vmem:[#allocation10 + $0x78] sm:$0xff] }
  0x41   :  { %162 = vmatprep.subr.mxu0 %v125_v5  ;;  %284 = vmatprep.subr.mxu1 %v225_v6  ;;  %v220_v12 = vld [vmem:[#allocation10 + $0x20] sm:$0xff]  ;;  %v230_v13 = vld [vmem:[#allocation10 + $0x70] sm:$0xff]  ;;  %v217_v14 = vld [vmem:[#allocation10 + $0x8] sm:$0xff]  ;;  %v90_v26 = vsub.s32 0, %v89_v24  ;;  %v94_v27 = vsub.s32 1, %v89_v24  ;;  %v98_v32 = vsub.s32 2, %v89_v24  ;;  %v108_v34 = vunpack.c.0.s8 %v107_v29 }
  0x42   :  { %163 = vmatpush1.msra.mxu0 %v124_v7  ;;  %285 = vmatpush1.msra.mxu1 %v224_v8  ;;  %v227_v15 = vld [vmem:[#allocation10 + $0x58] sm:$0xff]  ;;  %v216_v16 = vld [vmem:[#allocation10] sm:$0xff]  ;;  %v226_v17 = vld [vmem:[#allocation10 + $0x50] sm:$0xff]  ;;  %v102_v33 = vsub.s32 3, %v89_v24 }
  0x43   :  { %452 = vmatmul.mubr.msk.f32.vlgmr.msra.gmra.mxu0 %vm128_vm0, %v123_v9  ;;  %286 = vmatprep.subr.mxu1 %v221_v10  ;;  %v215_v18 = vld [vmem:[#allocation5] sm:$0x3]  ;;  %v222_v20 = vld [vmem:[#allocation10 + $0x30] sm:$0xff]  ;;  %v86_v25 = vld [vmem:[#allocation7] sm:$0xf]  ;;  %v111_v39 = vsub.s32 %v108_v34, %v89_v24 }
  0x44   :  { %353 = vmatprep.subr.mxu0 %v231_v11  ;;  %287 = vmatpush1.msra.mxu1 %v220_v12  ;;  %v223_v19 = vld [vmem:[#allocation10 + $0x38] sm:$0xff]  ;;  %v218_v22 = vld [vmem:[#allocation10 + $0x10] sm:$0xff]  ;;  %v91_v30 = vrot.slane %v86_v25, %v90_v26  ;;  %v95_v31 = vrot.slane %v86_v25, %v94_v27  ;;  %v99_v35 = vrot.slane %v86_v25, %v98_v32 }
  0x45   :  { %354 = vmatpush1.msra.mxu0 %v230_v13  ;;  %288 = vmatprep.subr.mxu1 %v217_v14  ;;  %v219_v21 = vld [vmem:[#allocation10 + $0x18] sm:$0xff]  ;;  %v103_v36 = vrot.slane %v86_v25, %v102_v33 }
  0x46   :  { %355 = vmatprep.subr.mxu0 %v227_v15  ;;  %289 = vmatpush1.msra.mxu1 %v216_v16  ;;  %v104_v37 = vcombine.low %v91_v30, %v95_v31  ;;  %v232_v43 = vld [vmem:[%s671_s5] sm:$0xf]  ;;  %s607_s5 = smov [#allocation11]  }
  0x47   :  { %356 = vmatpush1.msra.mxu0 %v226_v17  ;;  %454 = vmatmul.mubr.msk.f32.vlgmr.msra.gmra.mxu1 %vm254_vm1, %v215_v18  ;;  %v105_v38 = vcombine.low %v99_v35, %v103_v36  ;;  %v237_v45 = vrot.slane %v232_v43, %v90_v26  ;;  %v241_v48 = vrot.slane %v232_v43, %v94_v27  ;;  %s441_s23 = sshll.u32 %s607_s5, 4  ;;  %s442_s23 = int_to_ptr.vmem [resolvable:$true] %s441_s23 }
  0x48   :  { %357 = vmatprep.subr.mxu0 %v223_v19  ;;  %393 = vmatprep.mubr.f32.mxu0 %v605_v0  ;;  %v112_v40 = vrot.slane %v104_v37, %v111_v39  ;;  %v245_v52 = vrot.slane %v232_v43, %v98_v32  ;;  %v249_v55 = vrot.slane %v232_v43, %v102_v33  ;;  %s568_s24 = scalar_lea.vmem %s442_s23, 320  ;;  %p573_p12 = scmp.lt.s32.totalorder %s442_s23, %s442_s23 }
  0x49   :  { %358 = vmatpush1.msra.mxu0 %v222_v20  ;;  %v119_v41 = vrot.slane %v105_v38, %v111_v39  ;;  %p569_p11 = scmp.ne.s32.totalorder %s442_s23, %s568_s24  ;;  %p574_p13 = scmp.lt.s32.totalorder %s568_s24, %s568_s24 }
  0x4a   :  { %359 = vmatprep.subr.mxu0 %v219_v21 }
  0x4b   :  { %360 = vmatpush1.msra.mxu0 %v218_v22  ;;  %v120_v42 = vcombine.low %v112_v40, %v119_v41  ;;  %p575_p0 = por %p574_p13, %p573_p12 }
  0x4c   :  { %455 = vmatmul.mubr.msk.f32.vlgmr.msra.gmra.mxu0 %vm254_vm1, %v215_v18 }
  0x4d   :  { %122 = vst [vmem:[#allocation11] sm:$0xff] %v120_v42  ;;  %p576_p1 = pnand %p575_p0, %p569_p11 }
 0x103   :  { %v198_v44 = vpop.f32.mrf.mxu0 }
 0x105   :  { %v200_v46 = vpop.f32.mrf.mxu0 }
 0x106   :  { %v205_v47 = vcombine.low %v198_v44, %v200_v46 }
 0x107   :  { %v324_v49 = vpop.f32.mrf.mxu1 }
 0x108   :  { %453 = vst.sshfl [vmem:[#allocation11 + $0x8] sm:$0x33 pattern:$0x76325410] %v205_v47  ;;  %v325_v50 = vadd.f32 %v324_v49, %v237_v45 }
 0x109   :  { %v326_v51 = vpop.f32.mrf.mxu1 }
 0x10a   :  { %vm400_vm2 = vcmp.ge.f32.partialorder %v325_v50, 0.0  ;;  %v404_v53 = vmul.f32 0.2, %v325_v50  ;;  %v327_v54 = vadd.f32 %v326_v51, %v241_v48 }
 0x10c   :  { %v408_v56 = vsel %vm400_vm2, %v325_v50, %v404_v53  ;;  %vm401_vm3 = vcmp.ge.f32.partialorder %v327_v54, 0.0  ;;  %v405_v57 = vmul.f32 0.2, %v327_v54  ;;  %v395_v58 = vpop.f32.mrf.mxu0 }
 0x10d   :  { %v396_v59 = vadd.f32 %v395_v58, %v245_v52 }
 0x10e   :  { %v409_v60 = vsel %vm401_vm3, %v327_v54, %v405_v57  ;;  %v397_v61 = vpop.f32.mrf.mxu0 }
 0x10f   :  { %v416_v62 = vcombine.low %v408_v56, %v409_v60  ;;  %v406_v63 = vmul.f32 0.2, %v396_v59  ;;  %v398_v0 = vadd.f32 %v397_v61, %v249_v55  ;;  %vm402_vm4 = vcmp.ge.f32.partialorder %v396_v59, 0.0 }
 0x111   :  { %vm403_vm5 = vcmp.ge.f32.partialorder %v398_v0, 0.0  ;;  %v407_v1 = vmul.f32 0.2, %v398_v0  ;;  %v410_v2 = vsel %vm402_vm4, %v396_v59, %v406_v63  ;;  %v424_v5 = vrot.slane %v416_v62, %v111_v39 }
 0x113   :  { %v411_v3 = vsel %vm403_vm5, %v398_v0, %v407_v1 }
 0x114   :  { %v417_v4 = vcombine.low %v410_v2, %v411_v3 }
 0x116   :  { %v431_v6 = vrot.slane %v417_v4, %v111_v39 }
 0x118   :  { %v432_v7 = vcombine.low %v424_v5, %v431_v6 }
 0x11a   :  { %434 = vst [vmem:[#allocation11 + $0xc] sm:$0xff] %v432_v7 }
 0x11b   :  { %579 = shalt.err (!%p576_p1)
}
 0x11c   :  { %444 = dma.vmem_to_hbm [thread:$0]  %s442_s23, 320, %s672_s6, [#allocation4]  }
 0x11d   :  { %594 = dma.done.wait [#allocation4], 320  }
 0x11e   :  { %595 = vsyncadd [#allocation4], 4294966976 }
 0x11f   :  { %448 = vsyncpa [#allocation3], 1 }
 0x120   :  { %449 = vsyncpa [#allocation6], 1 }
 0x121   :  { %450 = vsyncpa [#allocation9], 1 }
 0x122   :  { %451 = vsyncpa [#allocation4], 1 }

</bundles_post_ra>
